<compile_context>
chip_gen: v5e
topology: v5e:2x2
jax: 0.10.0
libtpu: 0.0.40
codegen_flags: <defaults>
</compile_context>

<pallas_src>
import functools
import math

import jax
import jax.numpy as jnp
from jax.experimental import pallas as pl
from jax.experimental.pallas import tpu as pltpu


# --------------------------------------------------------------------------
# kernel
# --------------------------------------------------------------------------
def _kan_layer_body(x, coef, w_spline, w_base, *, spline_order):
    """One KANLinear layer on a resident row tile.

    x        : (TN, IN)            f32 activations
    coef     : (2+3*K, S_pad*IN)   f32 lane-stacked grid rows / reciprocals
    w_spline : (S_pad*IN, OUT_pad) bf16 scaled spline weight (zero rows >= C*IN)
    w_base   : (IN, OUT_pad)       bf16 base weight (transposed)
    returns  : (TN, OUT_pad)       f32 sigmoid(base + spline)
    """
    in_f = x.shape[1]
    width = coef.shape[1]

    # Lane-stacked replication of x.  Inner concat fills one 128-lane block;
    # outer concat copies whole vregs (near-free, boundaries 128-aligned).
    if in_f <= 128 and 128 % in_f == 0 and width % 128 == 0:
        x128 = jnp.concatenate([x] * (128 // in_f), axis=-1)        # (TN, 128)
        x_stk = jnp.concatenate([x128] * (width // 128), axis=-1)   # (TN, width)
    else:
        x_stk = jnp.concatenate([x] * (width // in_f), axis=-1)

    lo = coef[0:1]          # g_j
    hi_m_lo = coef[1:2]     # g_{j+1} - g_j
    xl = x_stk - lo         # x - g_j   (x_stk dead after this)

    # order-0 bases: indicator of [g_j, g_{j+1}) per segment, lane-dense.
    b = ((xl >= 0.0) & (xl < hi_m_lo)).astype(jnp.float32)          # (TN, width)

    # Cox-de Boor recursion (statically unrolled).  Divides replaced by
    # precomputed reciprocals; shifted bases via XLU lane rotate.  Lanes that
    # wrap around land on segments whose inv_b row is exactly zero.
    for k in range(1, spline_order + 1):
        r = 2 + 3 * (k - 1)
        gk1_m_lo = coef[r:r + 1]      # g_{j+k+1} - g_j        (0 if OOB)
        inv_a = coef[r + 1:r + 2]     # 1 / (g_{j+k}   - g_j)  (0 if OOB)
        inv_b = coef[r + 2:r + 3]     # 1 / (g_{j+k+1} - g_{j+1}) (0 if OOB)
        b_next = pltpu.roll(b, width - in_f, 1)                 # b[j+1] per segment
        b = xl * inv_a * b + (gk1_m_lo - xl) * inv_b * b_next

    silu = x * jax.nn.sigmoid(x)                                   # (TN, IN)

    # Two lane-aligned MXU dots (spline rows past C*IN are zero weights).
    acc = jnp.dot(b.astype(w_spline.dtype), w_spline,
                  preferred_element_type=jnp.float32)
    acc = acc + jnp.dot(silu.astype(w_base.dtype), w_base,
                        preferred_element_type=jnp.float32)        # (TN, OUT_pad)
    return jax.nn.sigmoid(acc)


def _kan_stack_kernel(*refs, spline_order):
    """Fused forward of the whole KAN stack for one row tile.

    refs = (x_ref, [coef_ref, w_spline_ref, w_base_ref] * L, o_ref)
    """
    x_ref, o_ref = refs[0], refs[-1]
    n_layers = (len(refs) - 2) // 3

    h = x_ref[...].astype(jnp.float32)
    for li in range(n_layers):
        coef = refs[1 + 3 * li][...]
        w_spline = refs[2 + 3 * li][...]
        w_base = refs[3 + 3 * li][...]
        h = _kan_layer_body(h, coef, w_spline, w_base, spline_order=spline_order)
    o_ref[...] = h.astype(o_ref.dtype)


# --------------------------------------------------------------------------
# wrapper: weight/grid table prep + pallas_call
# --------------------------------------------------------------------------
def _build_layer_tables(grid, base_weight, spline_weight, spline_scaler,
                        *, spline_order, mxu_dtype, out_pad):
    """Precompute lane-stacked grid rows / reciprocals and the padded weights."""
    out_f, in_f = base_weight.shape
    n_grid = grid.shape[1]                      # grid_size + 2*spline_order + 1
    n_seg = n_grid - 1
    n_coef = n_seg - spline_order               # C = grid_size + spline_order

    # pad segment count so the lane-stacked width is a multiple of 128
    if in_f <= 128 and 128 % in_f == 0:
        group = 128 // in_f
        s_pad = -(-n_seg // group) * group
    else:
        s_pad = n_seg
    width = s_pad * in_f

    g = grid.astype(jnp.float32)                # (IN, NG), g[:, j] = knot j
    zeros = jnp.zeros((in_f,), jnp.float32)

    def stack(cols):                            # list of (IN,) -> (S_pad*IN,)
        return jnp.concatenate(list(cols) + [zeros] * (s_pad - n_seg), axis=0)

    rows = [stack([g[:, j] for j in range(n_seg)]),                   # g_j
            stack([g[:, j + 1] - g[:, j] for j in range(n_seg)])]     # g_{j+1}-g_j
    for k in range(1, spline_order + 1):
        gk1, inva, invb = [], [], []
        for j in range(n_seg):
            gk1.append(g[:, j + k + 1] - g[:, j] if j + k + 1 < n_grid else zeros)
            inva.append(1.0 / (g[:, j + k] - g[:, j]) if j + k < n_grid else zeros)
            invb.append(1.0 / (g[:, j + k + 1] - g[:, j + 1])
                        if j + k + 1 < n_grid else zeros)
        rows += [stack(gk1), stack(inva), stack(invb)]
        # roll safety: the segment that receives lane-wrapped data (the last
        # one) must carry a zero inv_b multiplier at every recursion order.
        assert s_pad > n_seg or (n_seg - 1) + k + 1 >= n_grid
    coef = jnp.stack(rows, axis=0)                                    # (2+3K, width)

    # spline weight in segment-major layout, zero-padded to (width, out_pad)
    scaled = spline_weight * spline_scaler[:, :, None]                # (OUT, IN, C)
    w_spline = jnp.transpose(scaled, (2, 1, 0)).reshape(n_coef * in_f, out_f)
    w_spline = jnp.pad(w_spline.astype(jnp.float32),
                       ((0, width - n_coef * in_f), (0, out_pad - out_f)))
    w_base = jnp.pad(base_weight.T.astype(jnp.float32),
                     ((0, 0), (0, out_pad - out_f)))
    return coef, w_spline.astype(mxu_dtype), w_base.astype(mxu_dtype), s_pad


def kan_forward(x, layers, *, grid_size, spline_order, tile_n=1024,
                mxu_dtype=jnp.bfloat16):
    """KAN.forward: chain of KANLinear layers fused into one pallas_call.

    x: (..., in_features_0) -> (..., out_features_last).
    (update_grid / regularization_loss not supported.)
    """
    in_f0 = layers[0]["base_weight"].shape[1]
    out_f_last = layers[-1]["base_weight"].shape[0]
    orig_shape = x.shape
    x2 = x.reshape(-1, in_f0).astype(jnp.float32)
    n = x2.shape[0]

    # per-layer resident tables (only the final layer's OUT is 128-padded)
    tables, metas = [], []
    n_layers = len(layers)
    for li, p in enumerate(layers):
        out_f, in_f = p["base_weight"].shape
        is_last = li == n_layers - 1
        out_pad = ((out_f + 127) // 128) * 128 if is_last else out_f
        coef, w_spline, w_base, s_pad = _build_layer_tables(
            p["grid"], p["base_weight"], p["spline_weight"], p["spline_scaler"],
            spline_order=spline_order, mxu_dtype=mxu_dtype, out_pad=out_pad)
        tables += [coef, w_spline, w_base]
        metas.append((in_f, s_pad, out_pad))
    out_pad_last = metas[-1][2]

    # Row tile: large (amortize per-step overhead) but capped so the grid has
    # at least 2 steps (v7x has 2 TensorCores sharing the "parallel" axis).
    tn = min(tile_n, max(8, ((pl.cdiv(n, 2) + 7) // 8) * 8))
    tn = max(8, (tn // 8) * 8)
    n_pad = pl.cdiv(n, tn) * tn
    if n_pad != n:
        x2 = jnp.pad(x2, ((0, n_pad - n), (0, 0)))

    kernel = functools.partial(_kan_stack_kernel, spline_order=spline_order)

    in_specs = [pl.BlockSpec((tn, in_f0), lambda i: (i, 0))]
    for t in tables:
        in_specs.append(pl.BlockSpec(t.shape, lambda i: (0, 0)))   # resident

    # advisory cost estimate
    flops, transc = 0, 0
    bytes_acc = 4 * (n_pad * in_f0 + n_pad * out_pad_last)
    for (in_f, s_pad, out_pad) in metas:
        width = s_pad * in_f
        flops += n_pad * (2 * width * out_pad + 2 * in_f * out_pad
                          + 8 * width * spline_order)
        transc += n_pad * (in_f + out_pad)
    for t in tables:
        bytes_acc += int(t.size) * t.dtype.itemsize

    out2 = pl.pallas_call(
        kernel,
        out_shape=jax.ShapeDtypeStruct((n_pad, out_pad_last), jnp.float32),
        grid=(n_pad // tn,),
        in_specs=in_specs,
        out_specs=pl.BlockSpec((tn, out_pad_last), lambda i: (i, 0)),
        compiler_params=pltpu.CompilerParams(
            dimension_semantics=("parallel",),
            vmem_limit_bytes=48 * 1024 * 1024),
        cost_estimate=pl.CostEstimate(flops=int(flops),
                                      transcendentals=int(transc),
                                      bytes_accessed=int(bytes_acc)),
    )(x2, *tables)

    return out2[:n, :out_f_last].reshape(*orig_shape[:-1], out_f_last)


# --------------------------------------------------------------------------
# pure-JAX reference (float32) for the correctness check
# --------------------------------------------------------------------------
def _b_splines_ref(x, grid, spline_order):
    xe = x[:, :, None]
    bases = ((xe >= grid[:, :-1]) & (xe < grid[:, 1:])).astype(x.dtype)
    for k in range(1, spline_order + 1):
        bases = ((xe - grid[:, : -(k + 1)])
                 / (grid[:, k:-1] - grid[:, : -(k + 1)]) * bases[:, :, :-1]
                 + (grid[:, k + 1:] - xe)
                 / (grid[:, k + 1:] - grid[:, 1:-k]) * bases[:, :, 1:])
    return bases


def _kan_ref(x, grid, base_weight, spline_weight, spline_scaler, spline_order):
    orig_shape = x.shape
    out_f, in_f = base_weight.shape
    x2 = x.reshape(-1, in_f)
    base = jax.nn.silu(x2) @ base_weight.T
    bases = _b_splines_ref(x2, grid, spline_order)            # (N, IN, C)
    scaled = spline_weight * spline_scaler[:, :, None]        # (OUT, IN, C)
    spline = bases.reshape(x2.shape[0], -1) @ scaled.reshape(out_f, -1).T
    out = jax.nn.sigmoid(base + spline)
    return out.reshape(*orig_shape[:-1], out_f)


# --------------------------------------------------------------------------
# self-test
# --------------------------------------------------------------------------
if __name__ == "__main__":
    # KAN hyperparameters: two KANLinear layers  32 -> 32 -> 16
    layers_hidden = [32, 32, 16]
    grid_size, spline_order = 4, 3
    grid_range = [-1.0, 1.0]

    key = jax.random.PRNGKey(0)
    key, k_x = jax.random.split(key)
    # small example input: (batch=2, seq=8, in_features=32)
    x = jax.random.uniform(k_x, (2, 8, layers_hidden[0]),
                           minval=-1.0, maxval=1.0, dtype=jnp.float32)

    # deterministic synthetic parameters (shapes match KANLinear.__init__;
    # the lstsq-based reset_parameters init is not reproduced — forward only)
    h = (grid_range[1] - grid_range[0]) / grid_size
    grid_1d = (jnp.arange(-spline_order, grid_size + spline_order + 1,
                          dtype=jnp.float32) * h + grid_range[0])

    layers = []
    for in_f, out_f in zip(layers_hidden, layers_hidden[1:]):
        key, k_bw, k_sw, k_ss = jax.random.split(key, 4)
        bound = 1.0 / math.sqrt(in_f)
        base_w = jax.random.uniform(k_bw, (out_f, in_f), minval=-bound,
                                    maxval=bound, dtype=jnp.float32)
        spline_w = 0.1 * jax.random.normal(
            k_sw, (out_f, in_f, grid_size + spline_order), dtype=jnp.float32)
        spline_s = jax.random.uniform(k_ss, (out_f, in_f), minval=-bound,
                                      maxval=bound, dtype=jnp.float32)
        grid = jnp.broadcast_to(grid_1d, (in_f, grid_1d.shape[0]))  # (IN, NG)
        layers.append(dict(grid=grid, base_weight=base_w,
                           spline_weight=spline_w, spline_scaler=spline_s))

    out = kan_forward(x, layers, grid_size=grid_size,
                      spline_order=spline_order, tile_n=1024)
    out = jax.block_until_ready(out)

    ref = x
    for p in layers:
        ref = _kan_ref(ref, p["grid"], p["base_weight"], p["spline_weight"],
                       p["spline_scaler"], spline_order)

    assert out.shape == (2, 8, layers_hidden[-1])
    # bf16 MXU operands (f32 accumulation) -> loosened tolerance vs f32 ref.
    assert jnp.allclose(out, ref, atol=1e-2, rtol=1e-2), "mismatch vs reference"

    print("KERNEL_OK")
</pallas_src>

<mosaic_0001>
module attributes {stable_mosaic.version = 11 : i64} {
  func.func @_kan_stack_kernel(%arg0: i32, %arg1: memref<8x32xf32, #tpu.memory_space<vmem>>, %arg2: memref<11x384xf32, #tpu.memory_space<vmem>>, %arg3: memref<384x32xbf16, #tpu.memory_space<vmem>>, %arg4: memref<32x32xbf16, #tpu.memory_space<vmem>>, %arg5: memref<11x384xf32, #tpu.memory_space<vmem>>, %arg6: memref<384x128xbf16, #tpu.memory_space<vmem>>, %arg7: memref<32x128xbf16, #tpu.memory_space<vmem>>, %arg8: memref<8x128xf32, #tpu.memory_space<vmem>>) attributes {dimension_semantics = [#tpu.dimension_semantics<parallel>], iteration_bounds = array<i64: 2>, scalar_prefetch = 0 : i64, scratch_operands = 0 : i64, tpu.core_type = #tpu.core_type<tc>, window_params = [{transform_indices = @transform_0, window_bounds = array<i64: 8, 32>}, {pipeline_mode = #tpu.pipeline_mode<synchronous>, transform_indices = @transform_1, window_bounds = array<i64: 11, 384>}, {pipeline_mode = #tpu.pipeline_mode<synchronous>, transform_indices = @transform_2, window_bounds = array<i64: 384, 32>}, {pipeline_mode = #tpu.pipeline_mode<synchronous>, transform_indices = @transform_3, window_bounds = array<i64: 32, 32>}, {pipeline_mode = #tpu.pipeline_mode<synchronous>, transform_indices = @transform_4, window_bounds = array<i64: 11, 384>}, {pipeline_mode = #tpu.pipeline_mode<synchronous>, transform_indices = @transform_5, window_bounds = array<i64: 384, 128>}, {pipeline_mode = #tpu.pipeline_mode<synchronous>, transform_indices = @transform_6, window_bounds = array<i64: 32, 128>}, {transform_indices = @transform_7, window_bounds = array<i64: 8, 128>}]} {
    %c0 = arith.constant 0 : index
    %c0_0 = arith.constant 0 : index
    %0 = vector.load %arg1[%c0, %c0_0] : memref<8x32xf32, #tpu.memory_space<vmem>>, vector<8x32xf32>
    %c0_1 = arith.constant 0 : index
    %c0_2 = arith.constant 0 : index
    %1 = vector.load %arg2[%c0_1, %c0_2] : memref<11x384xf32, #tpu.memory_space<vmem>>, vector<11x384xf32>
    %c0_3 = arith.constant 0 : index
    %c0_4 = arith.constant 0 : index
    %2 = vector.load %arg3[%c0_3, %c0_4] : memref<384x32xbf16, #tpu.memory_space<vmem>>, vector<384x32xbf16>
    %c0_5 = arith.constant 0 : index
    %c0_6 = arith.constant 0 : index
    %3 = vector.load %arg4[%c0_5, %c0_6] : memref<32x32xbf16, #tpu.memory_space<vmem>>, vector<32x32xbf16>
    %4 = tpu.concatenate %0, %0, %0, %0 in 1 : vector<8x32xf32>, vector<8x32xf32>, vector<8x32xf32>, vector<8x32xf32> -> vector<8x128xf32>
    %5 = tpu.concatenate %4, %4, %4 in 1 : vector<8x128xf32>, vector<8x128xf32>, vector<8x128xf32> -> vector<8x384xf32>
    %6 = vector.extract_strided_slice %1 {offsets = [0, 0], sizes = [1, 384], strides = [1, 1]} : vector<11x384xf32> to vector<1x384xf32>
    %7 = vector.extract_strided_slice %1 {offsets = [1, 0], sizes = [1, 384], strides = [1, 1]} : vector<11x384xf32> to vector<1x384xf32>
    %8 = vector.broadcast %6 : vector<1x384xf32> to vector<8x384xf32>
    %9 = arith.subf %5, %8 : vector<8x384xf32>
    %cst = arith.constant 0.000000e+00 : f32
    %10 = vector.broadcast %cst : f32 to vector<8x384xf32>
    %11 = arith.cmpf oge, %9, %10 : vector<8x384xf32>
    %12 = vector.broadcast %7 : vector<1x384xf32> to vector<8x384xf32>
    %13 = arith.cmpf olt, %9, %12 : vector<8x384xf32>
    %14 = arith.andi %11, %13 : vector<8x384xi1>
    %15 = arith.extui %14 : vector<8x384xi1> to vector<8x384xi32>
    %16 = arith.sitofp %15 : vector<8x384xi32> to vector<8x384xf32>
    %17 = vector.extract_strided_slice %1 {offsets = [2, 0], sizes = [1, 384], strides = [1, 1]} : vector<11x384xf32> to vector<1x384xf32>
    %18 = vector.extract_strided_slice %1 {offsets = [3, 0], sizes = [1, 384], strides = [1, 1]} : vector<11x384xf32> to vector<1x384xf32>
    %19 = vector.extract_strided_slice %1 {offsets = [4, 0], sizes = [1, 384], strides = [1, 1]} : vector<11x384xf32> to vector<1x384xf32>
    %c352_i32 = arith.constant 352 : i32
    %20 = tpu.dynamic_rotate %16 by %c352_i32 dim 1 : vector<8x384xf32>, i32 -> vector<8x384xf32>
    %21 = vector.broadcast %18 : vector<1x384xf32> to vector<8x384xf32>
    %22 = arith.mulf %9, %21 : vector<8x384xf32>
    %23 = arith.mulf %22, %16 : vector<8x384xf32>
    %24 = vector.broadcast %17 : vector<1x384xf32> to vector<8x384xf32>
    %25 = arith.subf %24, %9 : vector<8x384xf32>
    %26 = vector.broadcast %19 : vector<1x384xf32> to vector<8x384xf32>
    %27 = arith.mulf %25, %26 : vector<8x384xf32>
    %28 = arith.mulf %27, %20 : vector<8x384xf32>
    %29 = arith.addf %23, %28 : vector<8x384xf32>
    %30 = vector.extract_strided_slice %1 {offsets = [5, 0], sizes = [1, 384], strides = [1, 1]} : vector<11x384xf32> to vector<1x384xf32>
    %31 = vector.extract_strided_slice %1 {offsets = [6, 0], sizes = [1, 384], strides = [1, 1]} : vector<11x384xf32> to vector<1x384xf32>
    %32 = vector.extract_strided_slice %1 {offsets = [7, 0], sizes = [1, 384], strides = [1, 1]} : vector<11x384xf32> to vector<1x384xf32>
    %c352_i32_7 = arith.constant 352 : i32
    %33 = tpu.dynamic_rotate %29 by %c352_i32_7 dim 1 : vector<8x384xf32>, i32 -> vector<8x384xf32>
    %34 = vector.broadcast %31 : vector<1x384xf32> to vector<8x384xf32>
    %35 = arith.mulf %9, %34 : vector<8x384xf32>
    %36 = arith.mulf %35, %29 : vector<8x384xf32>
    %37 = vector.broadcast %30 : vector<1x384xf32> to vector<8x384xf32>
    %38 = arith.subf %37, %9 : vector<8x384xf32>
    %39 = vector.broadcast %32 : vector<1x384xf32> to vector<8x384xf32>
    %40 = arith.mulf %38, %39 : vector<8x384xf32>
    %41 = arith.mulf %40, %33 : vector<8x384xf32>
    %42 = arith.addf %36, %41 : vector<8x384xf32>
    %43 = vector.extract_strided_slice %1 {offsets = [8, 0], sizes = [1, 384], strides = [1, 1]} : vector<11x384xf32> to vector<1x384xf32>
    %44 = vector.extract_strided_slice %1 {offsets = [9, 0], sizes = [1, 384], strides = [1, 1]} : vector<11x384xf32> to vector<1x384xf32>
    %45 = vector.extract_strided_slice %1 {offsets = [10, 0], sizes = [1, 384], strides = [1, 1]} : vector<11x384xf32> to vector<1x384xf32>
    %c352_i32_8 = arith.constant 352 : i32
    %46 = tpu.dynamic_rotate %42 by %c352_i32_8 dim 1 : vector<8x384xf32>, i32 -> vector<8x384xf32>
    %47 = vector.broadcast %44 : vector<1x384xf32> to vector<8x384xf32>
    %48 = arith.mulf %9, %47 : vector<8x384xf32>
    %49 = arith.mulf %48, %42 : vector<8x384xf32>
    %50 = vector.broadcast %43 : vector<1x384xf32> to vector<8x384xf32>
    %51 = arith.subf %50, %9 : vector<8x384xf32>
    %52 = vector.broadcast %45 : vector<1x384xf32> to vector<8x384xf32>
    %53 = arith.mulf %51, %52 : vector<8x384xf32>
    %54 = arith.mulf %53, %46 : vector<8x384xf32>
    %55 = arith.addf %49, %54 : vector<8x384xf32>
    %56 = arith.negf %0 : vector<8x32xf32>
    %57 = math.exp %56 : vector<8x32xf32>
    %cst_9 = arith.constant 1.000000e+00 : f32
    %58 = vector.broadcast %cst_9 : f32 to vector<8x32xf32>
    %59 = arith.addf %58, %57 : vector<8x32xf32>
    %60 = arith.divf %58, %59 : vector<8x32xf32>
    %61 = arith.mulf %0, %60 : vector<8x32xf32>
    %62 = arith.truncf %55 : vector<8x384xf32> to vector<8x384xbf16>
    %cst_10 = arith.constant dense<0.000000e+00> : vector<8x32xf32>
    %63 = tpu.matmul %62, %2, %cst_10 {dimension_numbers = #tpu.dot_dimension_numbers<[1], [0], [0], [1], [0, 0, 1, 1], [], []>} : vector<8x384xbf16>, vector<384x32xbf16>, vector<8x32xf32> -> vector<8x32xf32>
    %64 = arith.truncf %61 : vector<8x32xf32> to vector<8x32xbf16>
    %cst_11 = arith.constant dense<0.000000e+00> : vector<8x32xf32>
    %65 = tpu.matmul %64, %3, %cst_11 {dimension_numbers = #tpu.dot_dimension_numbers<[1], [0], [0], [1], [0, 0, 1, 1], [], []>} : vector<8x32xbf16>, vector<32x32xbf16>, vector<8x32xf32> -> vector<8x32xf32>
    %66 = arith.addf %63, %65 : vector<8x32xf32>
    %67 = arith.negf %66 : vector<8x32xf32>
    %68 = math.exp %67 : vector<8x32xf32>
    %cst_12 = arith.constant 1.000000e+00 : f32
    %69 = vector.broadcast %cst_12 : f32 to vector<8x32xf32>
    %70 = arith.addf %69, %68 : vector<8x32xf32>
    %71 = arith.divf %69, %70 : vector<8x32xf32>
    %c0_13 = arith.constant 0 : index
    %c0_14 = arith.constant 0 : index
    %72 = vector.load %arg5[%c0_13, %c0_14] : memref<11x384xf32, #tpu.memory_space<vmem>>, vector<11x384xf32>
    %c0_15 = arith.constant 0 : index
    %c0_16 = arith.constant 0 : index
    %73 = vector.load %arg6[%c0_15, %c0_16] : memref<384x128xbf16, #tpu.memory_space<vmem>>, vector<384x128xbf16>
    %c0_17 = arith.constant 0 : index
    %c0_18 = arith.constant 0 : index
    %74 = vector.load %arg7[%c0_17, %c0_18] : memref<32x128xbf16, #tpu.memory_space<vmem>>, vector<32x128xbf16>
    %75 = tpu.concatenate %71, %71, %71, %71 in 1 : vector<8x32xf32>, vector<8x32xf32>, vector<8x32xf32>, vector<8x32xf32> -> vector<8x128xf32>
    %76 = tpu.concatenate %75, %75, %75 in 1 : vector<8x128xf32>, vector<8x128xf32>, vector<8x128xf32> -> vector<8x384xf32>
    %77 = vector.extract_strided_slice %72 {offsets = [0, 0], sizes = [1, 384], strides = [1, 1]} : vector<11x384xf32> to vector<1x384xf32>
    %78 = vector.extract_strided_slice %72 {offsets = [1, 0], sizes = [1, 384], strides = [1, 1]} : vector<11x384xf32> to vector<1x384xf32>
    %79 = vector.broadcast %77 : vector<1x384xf32> to vector<8x384xf32>
    %80 = arith.subf %76, %79 : vector<8x384xf32>
    %cst_19 = arith.constant 0.000000e+00 : f32
    %81 = vector.broadcast %cst_19 : f32 to vector<8x384xf32>
    %82 = arith.cmpf oge, %80, %81 : vector<8x384xf32>
    %83 = vector.broadcast %78 : vector<1x384xf32> to vector<8x384xf32>
    %84 = arith.cmpf olt, %80, %83 : vector<8x384xf32>
    %85 = arith.andi %82, %84 : vector<8x384xi1>
    %86 = arith.extui %85 : vector<8x384xi1> to vector<8x384xi32>
    %87 = arith.sitofp %86 : vector<8x384xi32> to vector<8x384xf32>
    %88 = vector.extract_strided_slice %72 {offsets = [2, 0], sizes = [1, 384], strides = [1, 1]} : vector<11x384xf32> to vector<1x384xf32>
    %89 = vector.extract_strided_slice %72 {offsets = [3, 0], sizes = [1, 384], strides = [1, 1]} : vector<11x384xf32> to vector<1x384xf32>
    %90 = vector.extract_strided_slice %72 {offsets = [4, 0], sizes = [1, 384], strides = [1, 1]} : vector<11x384xf32> to vector<1x384xf32>
    %c352_i32_20 = arith.constant 352 : i32
    %91 = tpu.dynamic_rotate %87 by %c352_i32_20 dim 1 : vector<8x384xf32>, i32 -> vector<8x384xf32>
    %92 = vector.broadcast %89 : vector<1x384xf32> to vector<8x384xf32>
    %93 = arith.mulf %80, %92 : vector<8x384xf32>
    %94 = arith.mulf %93, %87 : vector<8x384xf32>
    %95 = vector.broadcast %88 : vector<1x384xf32> to vector<8x384xf32>
    %96 = arith.subf %95, %80 : vector<8x384xf32>
    %97 = vector.broadcast %90 : vector<1x384xf32> to vector<8x384xf32>
    %98 = arith.mulf %96, %97 : vector<8x384xf32>
    %99 = arith.mulf %98, %91 : vector<8x384xf32>
    %100 = arith.addf %94, %99 : vector<8x384xf32>
    %101 = vector.extract_strided_slice %72 {offsets = [5, 0], sizes = [1, 384], strides = [1, 1]} : vector<11x384xf32> to vector<1x384xf32>
    %102 = vector.extract_strided_slice %72 {offsets = [6, 0], sizes = [1, 384], strides = [1, 1]} : vector<11x384xf32> to vector<1x384xf32>
    %103 = vector.extract_strided_slice %72 {offsets = [7, 0], sizes = [1, 384], strides = [1, 1]} : vector<11x384xf32> to vector<1x384xf32>
    %c352_i32_21 = arith.constant 352 : i32
    %104 = tpu.dynamic_rotate %100 by %c352_i32_21 dim 1 : vector<8x384xf32>, i32 -> vector<8x384xf32>
    %105 = vector.broadcast %102 : vector<1x384xf32> to vector<8x384xf32>
    %106 = arith.mulf %80, %105 : vector<8x384xf32>
    %107 = arith.mulf %106, %100 : vector<8x384xf32>
    %108 = vector.broadcast %101 : vector<1x384xf32> to vector<8x384xf32>
    %109 = arith.subf %108, %80 : vector<8x384xf32>
    %110 = vector.broadcast %103 : vector<1x384xf32> to vector<8x384xf32>
    %111 = arith.mulf %109, %110 : vector<8x384xf32>
    %112 = arith.mulf %111, %104 : vector<8x384xf32>
    %113 = arith.addf %107, %112 : vector<8x384xf32>
    %114 = vector.extract_strided_slice %72 {offsets = [8, 0], sizes = [1, 384], strides = [1, 1]} : vector<11x384xf32> to vector<1x384xf32>
    %115 = vector.extract_strided_slice %72 {offsets = [9, 0], sizes = [1, 384], strides = [1, 1]} : vector<11x384xf32> to vector<1x384xf32>
    %116 = vector.extract_strided_slice %72 {offsets = [10, 0], sizes = [1, 384], strides = [1, 1]} : vector<11x384xf32> to vector<1x384xf32>
    %c352_i32_22 = arith.constant 352 : i32
    %117 = tpu.dynamic_rotate %113 by %c352_i32_22 dim 1 : vector<8x384xf32>, i32 -> vector<8x384xf32>
    %118 = vector.broadcast %115 : vector<1x384xf32> to vector<8x384xf32>
    %119 = arith.mulf %80, %118 : vector<8x384xf32>
    %120 = arith.mulf %119, %113 : vector<8x384xf32>
    %121 = vector.broadcast %114 : vector<1x384xf32> to vector<8x384xf32>
    %122 = arith.subf %121, %80 : vector<8x384xf32>
    %123 = vector.broadcast %116 : vector<1x384xf32> to vector<8x384xf32>
    %124 = arith.mulf %122, %123 : vector<8x384xf32>
    %125 = arith.mulf %124, %117 : vector<8x384xf32>
    %126 = arith.addf %120, %125 : vector<8x384xf32>
    %127 = arith.negf %71 : vector<8x32xf32>
    %128 = math.exp %127 : vector<8x32xf32>
    %cst_23 = arith.constant 1.000000e+00 : f32
    %129 = vector.broadcast %cst_23 : f32 to vector<8x32xf32>
    %130 = arith.addf %129, %128 : vector<8x32xf32>
    %131 = arith.divf %129, %130 : vector<8x32xf32>
    %132 = arith.mulf %71, %131 : vector<8x32xf32>
    %133 = arith.truncf %126 : vector<8x384xf32> to vector<8x384xbf16>
    %cst_24 = arith.constant dense<0.000000e+00> : vector<8x128xf32>
    %134 = tpu.matmul %133, %73, %cst_24 {dimension_numbers = #tpu.dot_dimension_numbers<[1], [0], [0], [1], [0, 0, 1, 1], [], []>} : vector<8x384xbf16>, vector<384x128xbf16>, vector<8x128xf32> -> vector<8x128xf32>
    %135 = arith.truncf %132 : vector<8x32xf32> to vector<8x32xbf16>
    %cst_25 = arith.constant dense<0.000000e+00> : vector<8x128xf32>
    %136 = tpu.matmul %135, %74, %cst_25 {dimension_numbers = #tpu.dot_dimension_numbers<[1], [0], [0], [1], [0, 0, 1, 1], [], []>} : vector<8x32xbf16>, vector<32x128xbf16>, vector<8x128xf32> -> vector<8x128xf32>
    %137 = arith.addf %134, %136 : vector<8x128xf32>
    %138 = arith.negf %137 : vector<8x128xf32>
    %139 = math.exp %138 : vector<8x128xf32>
    %cst_26 = arith.constant 1.000000e+00 : f32
    %140 = vector.broadcast %cst_26 : f32 to vector<8x128xf32>
    %141 = arith.addf %140, %139 : vector<8x128xf32>
    %142 = arith.divf %140, %141 : vector<8x128xf32>
    %c0_27 = arith.constant 0 : index
    %c0_28 = arith.constant 0 : index
    %143 = vector.load %arg8[%c0_27, %c0_28] : memref<8x128xf32, #tpu.memory_space<vmem>>, vector<8x128xf32>
    tpu.vector_store %arg8[%c0_27, %c0_28], %142 {strides = array<i32>} : memref<8x128xf32, #tpu.memory_space<vmem>>, vector<8x128xf32>,
    return
  }
  func.func @transform_0(%arg0: i32) -> (i32, i32) {
    %c0_i32 = arith.constant 0 : i32
    %c0_i32_0 = arith.constant 0 : i32
    return %arg0, %c0_i32 : i32, i32
  }
  func.func @transform_1(%arg0: i32) -> (i32, i32) {
    %c0_i32 = arith.constant 0 : i32
    %c0_i32_0 = arith.constant 0 : i32
    %c0_i32_1 = arith.constant 0 : i32
    return %c0_i32, %c0_i32_0 : i32, i32
  }
  func.func @transform_2(%arg0: i32) -> (i32, i32) {
    %c0_i32 = arith.constant 0 : i32
    %c0_i32_0 = arith.constant 0 : i32
    %c0_i32_1 = arith.constant 0 : i32
    return %c0_i32, %c0_i32_0 : i32, i32
  }
  func.func @transform_3(%arg0: i32) -> (i32, i32) {
    %c0_i32 = arith.constant 0 : i32
    %c0_i32_0 = arith.constant 0 : i32
    %c0_i32_1 = arith.constant 0 : i32
    return %c0_i32, %c0_i32_0 : i32, i32
  }
  func.func @transform_4(%arg0: i32) -> (i32, i32) {
    %c0_i32 = arith.constant 0 : i32
    %c0_i32_0 = arith.constant 0 : i32
    %c0_i32_1 = arith.constant 0 : i32
    return %c0_i32, %c0_i32_0 : i32, i32
  }
  func.func @transform_5(%arg0: i32) -> (i32, i32) {
    %c0_i32 = arith.constant 0 : i32
    %c0_i32_0 = arith.constant 0 : i32
    %c0_i32_1 = arith.constant 0 : i32
    return %c0_i32, %c0_i32_0 : i32, i32
  }
  func.func @transform_6(%arg0: i32) -> (i32, i32) {
    %c0_i32 = arith.constant 0 : i32
    %c0_i32_0 = arith.constant 0 : i32
    %c0_i32_1 = arith.constant 0 : i32
    return %c0_i32, %c0_i32_0 : i32, i32
  }
  func.func @transform_7(%arg0: i32) -> (i32, i32) {
    %c0_i32 = arith.constant 0 : i32
    %c0_i32_0 = arith.constant 0 : i32
    return %arg0, %c0_i32 : i32, i32
  }
}

</mosaic_0001>

<bundles_post_ra>
// kernel: tpu_custom_call.1
= control target key start
LH: loop header
LB: loop body
LE: loop exit
PB: predicated region body
PF: predicated region fallthrough
CT: control target
= control target key end

     0   :  { %s2600_s0 = inlined_call_operand.hbm [shape: f32[16,32], index: 0, kind: input, shape index: {}]   ;;  %s2601_s1 = inlined_call_operand.vmem [shape: f32[11,384], index: 1, kind: input, shape index: {}]   ;;  %s2602_s2 = inlined_call_operand.vmem [shape: bf16[384,32], index: 2, kind: input, shape index: {}]   ;;  %s2603_s3 = inlined_call_operand.hbm [shape: bf16[32,32], index: 3, kind: input, shape index: {}]   ;;  %s2604_s4 = inlined_call_operand.hbm [shape: f32[11,384], index: 4, kind: input, shape index: {}]   ;;  %s2605_s5 = inlined_call_operand.vmem [shape: bf16[384,128], index: 5, kind: input, shape index: {}]   ;;  %s2606_s6 = inlined_call_operand.hbm [shape: bf16[32,128], index: 6, kind: input, shape index: {}]   ;;  %s2607_s7 = inlined_call_operand.hbm [shape: f32[16,128], index: 7, kind: output, shape index: {}]  }
   0x1   :  { %2608 = sst [smem:[#allocation15_spill]] %s2603_s3 }
   0x2   :  { %12 = vsyncpa [#allocation3], 0 }
   0x3   :  { %14 = vsyncpa [#allocation3 + $0x1], 0 }
   0x4   :  { %15 = vsyncpa [#allocation6], 0 }
   0x5   :  { %16 = vsyncpa [#allocation9], 0 }
   0x6   :  { %17 = vsyncpa [#allocation4], 0 }
   0x7   :  { %19 = vsyncpa [#allocation4 + $0x1], 0  ;;  %s2032_s24 = smov 0   ;;  %s2034_s25 = smov 0  }
   0x8   :  { %s2036_s26 = smov 0   ;;  %s2038_s27 = smov 0  }
   0x9 LB: > { %s2609_s3 = sld [smem:[#allocation15_spill]]  ;;  %s2056_s8 = sadd.s32 4294967295, %s1979_s27   ;;  %s1979_s27 = sphi %s2038_s27, %s2620_s27   ;;  %s1975_s26 = sphi %s2036_s26, %s2619_s26   ;;  %s1971_s25 = sphi %s2034_s25, %s2618_s25   ;;  %s1967_s24 = sphi %s2032_s24, %s2617_s24  }
   0xa   : > { %p1385_p0 = scmp.ge.s32.totalorder %s1979_s27, 1  ;;  %p46_p1 = scmp.eq.s32.totalorder %s2056_s8, 0 }
   0xb   : > { %p208_p2 = scmp.lt.s32.totalorder %s1979_s27, 3  ;;  %s1981_s10 = smov [#allocation5]  }
   0xc   : > { %s227_s11 = sshll.u32 %s1981_s10, 4  ;;  %s239_s14 = sshll.u32 %s2604_s4, 4  ;;  %s228_s11 = int_to_ptr.vmem [resolvable:$true] %s227_s11  ;;  %s240_s14 = int_to_ptr.hbm [resolvable:$true] %s239_s14 }
   0xd   : > { %p2061_p3 = pnand %p1385_p0, %p208_p2  ;;  %s1982_s16 = smov [#allocation7]  }
   0xe   : > { %s241_s17 = sshll.u32 %s1982_s16, 4  ;;  %s1983_s18 = smov 64   ;;  %s242_s17 = int_to_ptr.vmem [resolvable:$true] %s241_s17 }
   0xf   : > { %s225_s30 = sshll.u32 %s2609_s3, 4  ;;  %p1690_p4 = pneg %p2061_p3  ;;  %s226_s30 = int_to_ptr.hbm [resolvable:$true] %s225_s30 }
  0x10   : > { %s1984_s19 = smov 4   ;;  %s1985_s20 = smov 384  }
  0x11   : > { %p2073_p6 = pnand %p1690_p4, %p46_p1  ;;  %s1986_s21 = smov 24  }
  0x12   : > { %s256_s28 = sshll.u32 %s2606_s6, 4  ;;  %s1987_s29 = smov [#allocation8]   ;;  %s257_s28 = int_to_ptr.hbm [resolvable:$true] %s256_s28 }
  0x13   : > { %1693 = dma.hbm_to_vmem [thread:$0]  (!%p2073_p6), %s226_s30, 256, %s228_s11, [#allocation6], %s1983_s18, %s1983_s18, %s1984_s19  }
  0x14   : > { %1696 = dma.hbm_to_vmem [thread:$0]  (!%p2073_p6), %s240_s14, 768, %s242_s17, [#allocation6], %s1985_s20, %s1985_s20, %s1986_s21  }
  0x15   : > { %s258_s10 = sshll.u32 %s1987_s29, 4  ;;  %s1384_s30 = sadd.s32 4294967294, %s1979_s27   ;;  %s259_s10 = int_to_ptr.vmem [resolvable:$true] %s258_s10 }
  0x16   : > { %1699 = dma.hbm_to_vmem [thread:$0]  (!%p2073_p6), %s257_s28, 256, %s259_s10, [#allocation9], %s1983_s18, %s1983_s18, %s1984_s19  }
  0x17   : > { %s2088_s11 = sadd.s32 1, %s1979_s27   ;;  %s32_s12 = sadd.s32 1, %s1975_s26 }
  0x18   : > { %s29_s13 = ssub.s32 %s1979_s27, %s2088_s11  ;;  %p39_p7 = scmp.ne.s32.totalorder %s1975_s26, %s1971_s25 }
  0x19   : > { %p30_p8 = scmp.eq.s32.totalorder %s29_s13, 0  ;;  %p40_p9 = scmp.eq.s32.totalorder %s1979_s27, 0 }
  0x1a   : > { %p45_p10 = scmp.ne.s32.totalorder %s1971_s25, %s1967_s24  ;;  %p195_p11 = scmp.eq.s32.totalorder %s2056_s8, 1 }
  0x1b   : > { %s2100_s14 = scalar_select %p30_p8, %s1975_s26, %s32_s12  }
  0x1c   : > { %p2104_p12 = por %p46_p1, %p45_p10  ;;  %p2108_p13 = por %p195_p11, %p39_p7 }
  0x1d   : > { %p201_p0 = scmp.eq.s32.totalorder %s1384_s30, 1  ;;  %p41_p2 = por %p40_p9, %p39_p7 }
  0x1e   : > { %s272_s17 = sand.u32 1, %s1975_s26   ;;  %p1711_p6 = scmp.lt.s32.totalorder %s1979_s27, 2 }
  0x1f   : > { %p2113_p4 = por %p201_p0, %p45_p10  ;;  %s1390_s19 = sshll.u32 %s272_s17, 3 }
  0x20   : > { %s1391_s20 = sshll.u32 %s1979_s27, 3  ;;  %s276_s29 = scalar_lea.vmem [#allocation2], %s1390_s19 }
  0x21   : > { %s280_s23 = scalar_lea.hbm %s2600_s0, %s1391_s20  ;;  %s284_s10 = sshll.u32 %s276_s29, 4  ;;  %s285_s10 = int_to_ptr.vmem [resolvable:$true] %s284_s10 }
  0x22   : > { %s282_s28 = sshll.u32 %s280_s23, 4  ;;  %p2122_p8 = pnand %p1711_p6, %p41_p2  ;;  %s283_s28 = int_to_ptr.hbm [resolvable:$true] %s282_s28 }
  0x23   : > { %s273_s12 = scalar_lea.sflag [#allocation3], %s272_s17  ;;  %s1875_s13 = sshra.s32 %s283_s28, 4  ;;  %s1876_s13 = int_to_ptr.hbm [resolvable:$true] %s1875_s13 }
  0x24   : > { %s1877_s3 = scalar_lea.hbm %s1876_s13, 8  ;;  %p1879_p9 = pneg %p2122_p8 }
  0x25   : > { %p1878_p7 = scmp.ne.s32.totalorder %s1876_s13, %s1877_s3  ;;  %s1882_s19 = scalar_lea.hbm %s2600_s0, 16 }
  0x26   : > { %p1883_p0 = scmp.lt.s32.totalorder %s1876_s13, %s2600_s0  ;;  %p1884_p2 = scmp.lt.s32.totalorder %s1882_s19, %s1877_s3 }
  0x27   : > { %p1880_p10 = pnand %p1879_p9, %p1878_p7 }
  0x28   : > { %p1885_p6 = por %p1884_p2, %p1883_p0 }
  0x29   : > { %p1881_p11 = pneg %p1880_p10 }
  0x2b   : > { %p1886_p5 = pnand %p1885_p6, %p1881_p11 }
  0x2d   : > { %1889 = shalt.err (!%p1886_p5)
}
  0x2e   : > { %1703 = dma.hbm_to_vmem [thread:$0]  (!%p2122_p8), %s283_s28, 128, %s285_s10, %s273_s12  }
  0x2f   : > { %293 = sbr.rel (%p2061_p3) target bundleno = 1367 (0x557), region = 48  ;;  %s2139_s17 = sand.u32 (!%p2061_p3), 1, %s1971_s25  }
  0x30   : > { %s1393_s29 = sshll.u32 (!%p2061_p3), %s2139_s17, 3  ;;  %s296_s20 = scalar_lea.sflag (!%p2061_p3), [#allocation3], %s2139_s17 }
  0x31   : > { %s299_s3 = scalar_lea.vmem (!%p2061_p3), [#allocation2], %s1393_s29 }
  0x34   : > { %1950 = dma.done.wait (%p2104_p12), %s296_s20, 128  }
  0x35   : > { %1952 = vsyncadd (%p2104_p12), %s296_s20, 4294967168 }
  0x36   : > { %1954 = dma.done.wait (%p46_p1), [#allocation6], 1024  }
  0x37   : > { %1956 = vsyncadd (%p46_p1), [#allocation6], 4294966272 }
  0x38   : > { %1958 = dma.done.wait (%p46_p1), [#allocation9], 256  }
  0x39   : > { %1960 = vsyncadd (%p46_p1), [#allocation9], 4294967040  ;;  %v2157_v0 = vld [vmem:[%s299_s3] sm:$0xff]  ;;  %s1988_s9 = smov 32   ;;  %s1989_s15 = smov 96   ;;  %v2178_v4 = vld [vmem:[%s2601_s1 + $0x10] sm:$0xff]  ;;  %v452_v63 = vlaneseq }
  0x3a   : > { %407 = vrot.lane.b32.xlu0 %v2157_v0, %s1988_s9  ;;  %413 = vrot.lane.b32.xlu1 %v2157_v0, %s1989_s15  ;;  %s1990_s28 = smov 64   ;;  %v2168_v2 = vld [vmem:[%s2601_s1] sm:$0xff]  ;;  %v2173_v3 = vld [vmem:[%s2601_s1 + $0x8] sm:$0xff]  ;;  %vm416_vm0 = vcmask 261120   ;;  %vm418_vm1 = vcmask 523264   ;;  %vm420_vm2 = vcmask 785408  }
  0x3b   : > { %v422_v5 = vperm.slane %v2168_v2, 0  ;;  %v423_v6 = vperm.slane %v2173_v3, 0  ;;  %v424_v7 = vperm.slane %v2178_v4, 0  ;;  %v433_v8 = vperm.slane %v2178_v4, 1  ;;  %s1619_s23 = sshll.u32 %s2056_s8, 3  ;;  %s1270_s8 = scalar_lea.sflag [#allocation4], %s2139_s17 }
  0x3c   : > { %v460_v9 = vperm.slane %v2178_v4, 3  ;;  %v431_v10 = vperm.slane %v2168_v2, 1  ;;  %v432_v11 = vperm.slane %v2173_v3, 1  ;;  %v459_v13 = vperm.slane %v2173_v3, 3  ;;  %s1925_s21 = scalar_lea.hbm %s2607_s7, 16 }
  0x3d   : > { %v468_v14 = vperm.slane %v2173_v3, 2  ;;  %v469_v15 = vperm.slane %v2178_v4, 2  ;;  %v458_v16 = vperm.slane %v2168_v2, 3  ;;  %v467_v19 = vperm.slane %v2168_v2, 2 }
  0x3e   : > { %v503_v20 = vperm.slane %v2168_v2, 5  ;;  %v474_v22 = vperm.slane %v2173_v3, 4  ;;  %v475_v23 = vperm.slane %v2178_v4, 4  ;;  %v504_v24 = vperm.slane %v2173_v3, 5 }
  0x3f   : > { %v473_v26 = vperm.slane %v2168_v2, 4  ;;  %v509_v27 = vperm.slane %v2168_v2, 7  ;;  %v505_v28 = vperm.slane %v2178_v4, 5  ;;  %v495_v32 = vperm.slane %v2173_v3, 6 }
  0x40   : > { %v510_v33 = vperm.slane %v2173_v3, 7  ;;  %v511_v34 = vperm.slane %v2178_v4, 7  ;;  %v496_v35 = vperm.slane %v2178_v4, 6  ;;  %v494_v36 = vperm.slane %v2168_v2, 6 }
  0x41   : > { %v1991_v39 = vmov 0.0  }
  0x42   : > { %410 = vrot.lane.b32.xlu0 %v2157_v0, %s1990_s28 }
  0xac   : > { %v408_v1 = vpop.permute.xlu0 %407  ;;  %v414_v12 = vpop.permute.xlu1 %413 }
  0xad   : > { %v417_v17 = vsel %vm416_vm0, %v2157_v0, %v408_v1  ;;  %v2237_v1 = vand.u32 127, %v452_v63  ;;  %v1633_v63 = vld [vmem:[%s2602_s2 + $0x58] sm:$0xff] }
  0xaf   : > { %vm454_vm12 = vcmp.lt.s32.totalorder %v2237_v1, 96 }
  0xb4   : > { %v411_v18 = vpop.permute.xlu0 %410 }
  0xb5   : > { %v419_v21 = vsel %vm418_vm1, %v417_v17, %v411_v18  ;;  %v2252_v18 = vld [vmem:[%s2601_s1 + $0x20] sm:$0x7] }
  0xb6   : > { %v421_v25 = vsel %vm420_vm2, %v419_v21, %v414_v12 }
  0xb7   : > { %v2203_v29 = vsub.f32 %v421_v25, %v422_v5  ;;  %v2205_v30 = vsub.f32 %v421_v25, %v423_v6  ;;  %v2207_v31 = vsub.f32 %v421_v25, %v424_v7 }
  0xb9   : > { %vm430_vm3 = vcmp.ge.f32.partialorder %v2207_v31, 0.0  ;;  %vm436_vm4 = vcmp.lt.f32.partialorder %v2207_v31, %v433_v8  ;;  %v463_v37 = vmul.f32 %v460_v9, %v2207_v31  ;;  %vm428_vm5 = vcmp.ge.f32.partialorder %v2203_v29, 0.0 }
  0xba   : > { %vm439_vm6 = vmand %vm430_vm3, %vm436_vm4  ;;  %vm429_vm7 = vcmp.ge.f32.partialorder %v2205_v30, 0.0  ;;  %vm434_vm8 = vcmp.lt.f32.partialorder %v2203_v29, %v431_v10  ;;  %vm435_vm9 = vcmp.lt.f32.partialorder %v2205_v30, %v432_v11  ;;  %v462_v38 = vmul.f32 %v459_v13, %v2205_v30 }
  0xbb   : > { %v1400_v40 = vsel %vm439_vm6, 1.0, %v1991_v39  ;;  %vm437_vm10 = vmand %vm428_vm5, %vm434_vm8  ;;  %v471_v41 = vsub.f32 %v468_v14, %v2205_v30  ;;  %v472_v42 = vsub.f32 %v469_v15, %v2207_v31  ;;  %v461_v43 = vmul.f32 %v458_v16, %v2203_v29 }
  0xbc   : > { %450 = vrot.lane.b32.xlu2 %v1400_v40, %s1989_s15  ;;  %v466_v44 = vmul.f32 %v1400_v40, %v463_v37  ;;  %vm438_vm11 = vmand %vm429_vm7, %vm435_vm9  ;;  %v1398_v45 = vsel %vm437_vm10, 1.0, %v1991_v39  ;;  %v470_v46 = vsub.f32 %v467_v19, %v2203_v29  ;;  %v506_v47 = vsub.f32 %v503_v20, %v2203_v29  ;;  %v2257_v19 = vld [vmem:[%s2601_s1 + $0x18] sm:$0x7]  ;;  %v2262_v20 = vld [vmem:[%s2601_s1 + $0x28] sm:$0x7] }
  0xbd   : > { %v1399_v48 = vsel %vm438_vm11, 1.0, %v1991_v39  ;;  %v477_v49 = vmul.f32 %v474_v22, %v471_v41  ;;  %v478_v50 = vmul.f32 %v475_v23, %v472_v42  ;;  %v464_v51 = vmul.f32 %v1398_v45, %v461_v43 }
  0xbe   : > { %v1759_v52 = vpack.i.bf16 %v1399_v48, %v1398_v45  ;;  %v465_v53 = vmul.f32 %v1399_v48, %v462_v38  ;;  %v476_v54 = vmul.f32 %v473_v26, %v470_v46  ;;  %v512_v55 = vmul.f32 %v509_v27, %v506_v47  ;;  %v1629_v47 = vld [vmem:[%s2602_s2 + $0x38] sm:$0xff] }
  0xbf   : > { %v507_v56 = vsub.f32 %v504_v24, %v2205_v30  ;;  %v508_v57 = vsub.f32 %v505_v28, %v2207_v31  ;;  %v498_v58 = vmul.f32 %v495_v32, %v2205_v30  ;;  %v499_v59 = vmul.f32 %v496_v35, %v2207_v31  ;;  %v1637_v48 = vld [vmem:[%s2602_s2 + $0x78] sm:$0xff]  ;;  %753 = vmatpush.bf16.msra.mxu1 %v1629_v47 }
  0xc0   : > { %1760 = vrot.lane.b32.xlu1 %v1759_v52, %s1989_s15  ;;  %v497_v60 = vmul.f32 %v494_v36, %v2203_v29  ;;  %v530_v22 = vperm.slane %v2257_v19, 1  ;;  %v531_v23 = vperm.slane %v2252_v18, 1  ;;  %v532_v26 = vperm.slane %v2262_v20, 1  ;;  %766 = vmatpush.bf16.msra.mxu2 %v1637_v48 }
  0xc1   : > { %v513_v61 = vmul.f32 %v510_v33, %v507_v56  ;;  %v514_v62 = vmul.f32 %v511_v34, %v508_v57  ;;  %v1401_v46 = vmul.f32 -1.442695, %v2157_v0  ;;  %v1627_v56 = vld [vmem:[%s2602_s2 + $0x28] sm:$0xff] }
  0xc2   : > { %v533_v36 = vmul.f32 %v530_v22, %v2203_v29  ;;  %v534_v37 = vmul.f32 %v531_v23, %v2205_v30  ;;  %v535_v42 = vmul.f32 %v532_v26, %v2207_v31  ;;  %v1635_v57 = vld [vmem:[%s2602_s2 + $0x68] sm:$0xff]  ;;  %v1638_v26 = vld [vmem:[%s2602_s2 + $0x80] sm:$0xff] }
  0xc3   : > { %1769 = vpow2.f32 %v1401_v46 }
  0xc9   : > { %v1770_v52 = vpop.eup %1769 }
 0x116   : > { %v451_v5 = vpop.permute.xlu2 %450 }
 0x132   : > { %v1761_v2 = vpop.permute.xlu1 %1760 }
 0x133   : > { %v1763_v3 = vunpack.i.h.bf16 %v1761_v2  ;;  %v1762_v4 = vunpack.i.l.bf16 %v1761_v2  ;;  %v1641_v2 = vld [vmem:[%s2602_s2 + $0x98] sm:$0xff] }
 0x135   : > { %v455_v6 = vsel %vm454_vm12, %v1763_v3, %v451_v5  ;;  %v456_v7 = vsel %vm454_vm12, %v1762_v4, %v1763_v3  ;;  %v457_v8 = vsel %vm454_vm12, %v451_v5, %v1762_v4  ;;  %v1624_v4 = vld [vmem:[%s2602_s2 + $0x10] sm:$0xff] }
 0x136   : > { %v480_v9 = vmul.f32 %v477_v49, %v455_v6  ;;  %v481_v10 = vmul.f32 %v478_v50, %v457_v8  ;;  %v479_v11 = vmul.f32 %v476_v54, %v456_v7  ;;  %v1645_v49 = vld [vmem:[%s2602_s2 + $0xb8] sm:$0xff]  ;;  %v1628_v50 = vld [vmem:[%s2602_s2 + $0x30] sm:$0xff] }
 0x137   : > { %779 = vmatpush.bf16.msra.mxu3 %v1645_v49  ;;  %v1647_v54 = vld [vmem:[#allocation5 + $0x8] sm:$0xff]  ;;  %754 = vmatpush.bf16.msra.mxu1 %v1628_v50  ;;  %v1632_v5 = vld [vmem:[%s2602_s2 + $0x50] sm:$0xff] }
 0x138   : > { %v483_v12 = vadd.f32 %v480_v9, %v465_v53  ;;  %v484_v13 = vadd.f32 %v481_v10, %v466_v44  ;;  %v482_v14 = vadd.f32 %v479_v11, %v464_v51  ;;  %v1636_v51 = vld [vmem:[%s2602_s2 + $0x70] sm:$0xff]  ;;  %602 = vmatpush.bf16.msra.mxu0 %v1647_v54 }
 0x139   : > { %v1644_v53 = vld [vmem:[%s2602_s2 + $0xb0] sm:$0xff]  ;;  %767 = vmatpush.bf16.msra.mxu2 %v1636_v51 }
 0x13a   : > { %487 = vrot.lane.b32.xlu0 %v483_v12, %s1989_s15  ;;  %489 = vrot.lane.b32.xlu1 %v484_v13, %s1989_s15  ;;  %v501_v15 = vmul.f32 %v498_v58, %v483_v12  ;;  %v502_v16 = vmul.f32 %v499_v59, %v484_v13  ;;  %v500_v17 = vmul.f32 %v497_v60, %v482_v14  ;;  %v1643_v58 = vld [vmem:[%s2602_s2 + $0xa8] sm:$0xff]  ;;  %v1626_v59 = vld [vmem:[%s2602_s2 + $0x20] sm:$0xff] }
 0x13b   : > { %485 = vrot.lane.b32.xlu2 %v482_v14, %s1989_s15  ;;  %780 = vmatpush.bf16.msra.mxu3 %v1644_v53  ;;  %v1634_v60 = vld [vmem:[%s2602_s2 + $0x60] sm:$0xff]  ;;  %v1640_v6 = vld [vmem:[%s2602_s2 + $0x90] sm:$0xff] }
 0x13c   : > { %755 = vmatpush.bf16.msra.mxu1 %v1627_v56  ;;  %v1646_v14 = vld [vmem:[#allocation5] sm:$0xff] }
 0x13d   : > { %768 = vmatpush.bf16.msra.mxu2 %v1635_v57  ;;  %603 = vmatpush.bf16.msra.mxu0 %v1646_v14 }
 0x13f   : > { %781 = vmatpush.bf16.msra.mxu3 %v1643_v58 }
 0x140   : > { %756 = vmatpush.bf16.msra.mxu1 %v1626_v59 }
 0x141   : > { %769 = vmatpush.bf16.msra.mxu2 %v1634_v60 }
 0x145   : > { %770 = vmatpush.bf16.msra.mxu2 %v1633_v63 }
 0x149   : > { %771 = vmatpush.bf16.msra.mxu2 %v1632_v5  ;;  %v1672_v5 = vld [vmem:[#allocation8] sm:$0xff] }
 0x195   : > { %v486_v21 = vpop.permute.xlu2 %485 }
 0x1ac   : > { %v488_v24 = vpop.permute.xlu0 %487  ;;  %v490_v25 = vpop.permute.xlu1 %489 }
 0x1ad   : > { %v492_v27 = vsel %vm454_vm12, %v486_v21, %v488_v24  ;;  %v491_v28 = vsel %vm454_vm12, %v488_v24, %v490_v25  ;;  %v493_v32 = vsel %vm454_vm12, %v490_v25, %v486_v21  ;;  %v1639_v21 = vld [vmem:[%s2602_s2 + $0x88] sm:$0xff]  ;;  %v1622_v24 = vld [vmem:[%s2602_s2] sm:$0xff] }
 0x1ae   : > { %v515_v33 = vmul.f32 %v512_v55, %v492_v27  ;;  %v516_v34 = vmul.f32 %v513_v61, %v491_v28  ;;  %v517_v35 = vmul.f32 %v514_v62, %v493_v32  ;;  %v560_v55 = vadd.f32 1.0, %v1770_v52  ;;  %v1642_v61 = vld [vmem:[%s2602_s2 + $0xa0] sm:$0xff]  ;;  %v1625_v62 = vld [vmem:[%s2602_s2 + $0x18] sm:$0xff] }
 0x1af   : > { %782 = vmatpush.bf16.msra.mxu3 %v1642_v61  ;;  %757 = vmatpush.bf16.msra.mxu1 %v1625_v62  ;;  %v1630_v25 = vld [vmem:[%s2602_s2 + $0x40] sm:$0xff]  ;;  %v539_v28 = vperm.slane %v2257_v19, 0  ;;  %v541_v32 = vperm.slane %v2262_v20, 0 }
 0x1b0   : > { %v519_v38 = vadd.f32 %v516_v34, %v501_v15  ;;  %v520_v40 = vadd.f32 %v517_v35, %v502_v16  ;;  %v518_v41 = vadd.f32 %v515_v33, %v500_v17  ;;  %1771 = vrcp.f32 %v560_v55  ;;  %v1623_v15 = vld [vmem:[%s2602_s2 + $0x8] sm:$0xff] }
 0x1b1   : > { %v572_v10 = vand.u32 2147483648, %v560_v55  ;;  %vm566_vm13 = vweird.f32 %v560_v55  ;;  %v570_v12 = vand.u32 2147483647, %v560_v55  ;;  %v1631_v16 = vld [vmem:[%s2602_s2 + $0x48] sm:$0xff]  ;;  %v546_v34 = vperm.slane %v2252_v18, 2 }
 0x1b2   : > { %523 = vrot.lane.b32.xlu2 %v519_v38, %s1989_s15  ;;  %525 = vrot.lane.b32.xlu0 %v520_v40, %s1989_s15  ;;  %v2278_v43 = vmul.f32 %v533_v36, %v518_v41  ;;  %v2280_v44 = vmul.f32 %v534_v37, %v519_v38  ;;  %v2282_v45 = vmul.f32 %v535_v42, %v520_v40  ;;  %v545_v37 = vperm.slane %v2257_v19, 2 }
 0x1b3   : > { %521 = vrot.lane.b32.xlu1 %v518_v41, %s1989_s15  ;;  %783 = vmatpush.bf16.msra.mxu3 %v1641_v2  ;;  %v573_v13 = vor.u32 1.1754944e-38, %v572_v10  ;;  %vm571_vm3 = vcmp.eq.f32.partialorder %v570_v12, 8.507059e+37  ;;  %v542_v35 = vsub.f32 %v539_v28, %v2203_v29  ;;  %v544_v36 = vsub.f32 %v541_v32, %v2207_v31 }
 0x1b4   : > { %758 = vmatpush.bf16.msra.mxu1 %v1624_v4  ;;  %772 = vmatpush.bf16.msra.mxu2 %v1631_v16  ;;  %v547_v38 = vperm.slane %v2262_v20, 2 }
 0x1b5   : > { %v548_v47 = vmul.f32 %v545_v37, %v542_v35  ;;  %v2384_v37 = vld [vmem:[#allocation7 + $0x8] sm:$0xff] }
 0x1b6   : > { %v1772_v3 = vpop.eup %1771  ;;  %v550_v48 = vmul.f32 %v547_v38, %v544_v36  ;;  %v2382_v36 = vld [vmem:[#allocation7] sm:$0xff]  ;;  %v2386_v38 = vld [vmem:[#allocation7 + $0x10] sm:$0xff] }
 0x1b7   : > { %v562_v7 = vmul.f32 %v1772_v3, %v560_v55  ;;  %784 = vmatpush.bf16.msra.mxu3 %v1640_v6  ;;  %vm567_vm14 = vweird.f32 %v1772_v3 }
 0x1b8   : > { %vm568_vm15 = vmor %vm566_vm13, %vm567_vm14  ;;  %759 = vmatpush.bf16.msra.mxu1 %v1623_v15  ;;  %773 = vmatpush.bf16.msra.mxu2 %v1630_v25 }
 0x1b9   : > { %v563_v8 = vsub.f32 1.0, %v562_v7 }
 0x1bb   : > { %v564_v9 = vmul.f32 %v1772_v3, %v563_v8  ;;  %785 = vmatpush.bf16.msra.mxu3 %v1639_v21 }
 0x1bc   : > { %760 = vmatpush.bf16.msra.mxu1 %v1622_v24 }
 0x1bd   : > { %v565_v11 = vadd.f32 %v1772_v3, %v564_v9 }
 0x1bf   : > { %v569_v17 = vsel %vm568_vm15, %v1772_v3, %v565_v11  ;;  %786 = vmatpush.bf16.msra.mxu3 %v1638_v26 }
 0x1c0   : > { %v574_v22 = vsel %vm571_vm3, %v573_v13, %v569_v17 }
 0x1c1   : > { %v576_v23 = vmul.f32 %v574_v22, %v2157_v0  ;;  %v540_v0 = vperm.slane %v2252_v18, 0 }
 0x1c3   : > { %v580_v27 = vpack.c.bf16 %v576_v23, %v576_v23  ;;  %v543_v33 = vsub.f32 %v540_v0, %v2205_v30 }
 0x1c5   : > { %1410 = vmatmul.msk.bf16.vlgmr.msra.gmra.mxu0 %vm416_vm0, %v580_v27  ;;  %v549_v41 = vmul.f32 %v546_v34, %v543_v33 }
 0x20c   : > { %v524_v40 = vpop.permute.xlu2 %523 }
 0x224   : > { %v526_v42 = vpop.permute.xlu0 %525 }
 0x225   : > { %v527_v46 = vsel %vm454_vm12, %v524_v40, %v526_v42  ;;  %v522_v49 = vpop.permute.xlu1 %521 }
 0x226   : > { %v552_v30 = vmul.f32 %v549_v41, %v527_v46  ;;  %v528_v18 = vsel %vm454_vm12, %v522_v49, %v524_v40  ;;  %v529_v29 = vsel %vm454_vm12, %v526_v42, %v522_v49  ;;  %v882_v41 = vperm.slane %v2382_v36, 0 }
 0x227   : > { %v551_v31 = vmul.f32 %v548_v47, %v528_v18  ;;  %v553_v19 = vmul.f32 %v550_v48, %v529_v29  ;;  %v883_v42 = vperm.slane %v2384_v37, 0  ;;  %v884_v46 = vperm.slane %v2386_v38, 0 }
 0x228   : > { %v555_v20 = vadd.f32 %v552_v30, %v2280_v44  ;;  %v893_v47 = vperm.slane %v2386_v38, 1  ;;  %v917_v48 = vperm.slane %v2386_v38, 3  ;;  %v891_v49 = vperm.slane %v2382_v36, 1 }
 0x229   : > { %v554_v50 = vadd.f32 %v551_v31, %v2278_v43  ;;  %v556_v51 = vadd.f32 %v553_v19, %v2282_v45  ;;  %v1673_v45 = vld [vmem:[#allocation8 + $0x8] sm:$0xff]  ;;  %v892_v18 = vperm.slane %v2384_v37, 1  ;;  %v915_v29 = vperm.slane %v2382_v36, 3 }
 0x22a   : > { %v578_v52 = vpack.c.bf16 %v555_v20, %v555_v20  ;;  %1059 = vmatpush.bf16.msrb.mxu0 %v1673_v45  ;;  %v924_v31 = vperm.slane %v2382_v36, 2  ;;  %v968_v45 = vperm.slane %v2386_v38, 7 }
 0x22b   : > { %v577_v53 = vpack.c.bf16 %v554_v50, %v554_v50  ;;  %v579_v54 = vpack.c.bf16 %v556_v51, %v556_v51  ;;  %v925_v50 = vperm.slane %v2384_v37, 2  ;;  %v926_v51 = vperm.slane %v2386_v38, 2 }
 0x22c   : > { %774 = vmatmul.bf16.vlgmr.msra.gmra.mxu2 %v578_v52  ;;  %v916_v52 = vperm.slane %v2384_v37, 3 }
 0x22d   : > { %761 = vmatmul.bf16.vlgmr.msra.gmra.mxu1 %v577_v53  ;;  %787 = vmatmul.bf16.vlgmr.msra.gmra.mxu3 %v579_v54  ;;  %v960_v53 = vperm.slane %v2382_v36, 5 }
 0x22e   : > { %1060 = vmatpush.bf16.msrb.mxu0 %v1672_v5 }
 0x242   : > { %v605_v55 = vpop.f32.mrf.mxu0 }
 0x24a   : > { %v607_v56 = vpop.f32.mrf.mxu0 }
 0x24b   : > { %v931_v56 = vperm.slane %v2384_v37, 4 }
 0x2aa   : > { %v762_v57 = vpop.f32.mrf.mxu1 }
 0x2ab   : > { %v763_v58 = vadd.f32 %v762_v57, %v605_v55  ;;  %v930_v55 = vperm.slane %v2382_v36, 4  ;;  %v951_v57 = vperm.slane %v2382_v36, 6 }
 0x2af   : > { %v775_v59 = vpop.f32.mrf.mxu2 }
 0x2b0   : > { %v776_v60 = vadd.f32 %v775_v59, %v763_v58  ;;  %v788_v61 = vpop.f32.mrf.mxu3  ;;  %v932_v59 = vperm.slane %v2386_v38, 4 }
 0x2b2   : > { %v789_v62 = vadd.f32 %v788_v61, %v776_v60  ;;  %v764_v63 = vpop.f32.mrf.mxu1  ;;  %v966_v60 = vperm.slane %v2382_v36, 7  ;;  %v961_v61 = vperm.slane %v2384_v37, 5 }
 0x2b4   : > { %v1507_v44 = vmul.f32 -1.442695, %v789_v62 }
 0x2b6   : > { %1773 = vpow2.f32 %v1507_v44 }
 0x2b7   : > { %v777_v43 = vpop.f32.mrf.mxu2 }
 0x2b8   : > { %v790_v2 = vpop.f32.mrf.mxu3  ;;  %v962_v43 = vperm.slane %v2386_v38, 5 }
 0x2b9   : > { %v967_v2 = vperm.slane %v2384_v37, 7 }
 0x2bc   : > { %v1774_v3 = vpop.eup %1773 }
 0x2bd   : > { %v795_v4 = vadd.f32 1.0, %v1774_v3  ;;  %v952_v3 = vperm.slane %v2384_v37, 6 }
 0x2bf   : > { %1775 = vrcp.f32 %v795_v4  ;;  %v807_v9 = vand.u32 2147483648, %v795_v4  ;;  %v805_v11 = vand.u32 2147483647, %v795_v4  ;;  %vm801_vm5 = vweird.f32 %v795_v4 }
 0x2c1   : > { %v808_v13 = vor.u32 1.1754944e-38, %v807_v9  ;;  %vm806_vm7 = vcmp.eq.f32.partialorder %v805_v11, 8.507059e+37 }
 0x2c5   : > { %v1776_v6 = vpop.eup %1775 }
 0x2c6   : > { %v797_v7 = vmul.f32 %v1776_v6, %v795_v4  ;;  %vm802_vm4 = vweird.f32 %v1776_v6  ;;  %v953_v4 = vperm.slane %v2386_v38, 6 }
 0x2c7   : > { %vm803_vm6 = vmor %vm801_vm5, %vm802_vm4 }
 0x2c8   : > { %v798_v8 = vsub.f32 1.0, %v797_v7 }
 0x2ca   : > { %v799_v10 = vmul.f32 %v1776_v6, %v798_v8 }
 0x2cc   : > { %v800_v12 = vadd.f32 %v1776_v6, %v799_v10 }
 0x2ce   : > { %v804_v14 = vsel %vm803_vm6, %v1776_v6, %v800_v12 }
 0x2cf   : > { %v809_v15 = vsel %vm806_vm7, %v808_v13, %v804_v14 }
 0x2d0   : > { %876 = vrot.lane.b32.xlu1 %v809_v15, %s1989_s15  ;;  %v1511_v16 = vmul.f32 -1.442695, %v809_v15  ;;  %873 = vrot.lane.b32.xlu0 %v809_v15, %s1990_s28  ;;  %s345_s28 = scalar_lea.vmem [#allocation10], %s1393_s29 }
 0x2d1   : > { %870 = vrot.lane.b32.xlu2 %v809_v15, %s1988_s9  ;;  %s1280_s9 = scalar_lea.hbm %s2607_s7, %s1619_s23  ;;  %s1282_s10 = sshll.u32 %s345_s28, 4  ;;  %s1283_s10 = int_to_ptr.vmem [resolvable:$true] %s1282_s10 }
 0x2d2   : > { %1777 = vpow2.f32 %v1511_v16  ;;  %s1284_s30 = sshll.u32 %s1280_s9, 4  ;;  %s1285_s30 = int_to_ptr.hbm [resolvable:$true] %s1284_s30 }
 0x2d3   : > { %s1919_s12 = sshra.s32 %s1285_s30, 4  ;;  %s1920_s12 = int_to_ptr.hbm [resolvable:$true] %s1919_s12 }
 0x2d4   : > { %s1921_s13 = scalar_lea.hbm %s1920_s12, 8  ;;  %p1926_p12 = scmp.lt.s32.totalorder %s1920_s12, %s2607_s7 }
 0x2d5   : > { %p1922_p1 = scmp.ne.s32.totalorder %s1920_s12, %s1921_s13  ;;  %p1927_p8 = scmp.lt.s32.totalorder %s1925_s21, %s1921_s13 }
 0x2d7   : > { %p1923_p3 = pnand %p1922_p1, %p2108_p13  ;;  %p1928_p7 = por %p1927_p8, %p1926_p12 }
 0x2d8   : > { %v1778_v17 = vpop.eup %1777 }
 0x2d9   : > { %v1017_v21 = vadd.f32 1.0, %v1778_v17  ;;  %p1924_p5 = pneg %p1923_p3 }
 0x2db   : > { %1779 = vrcp.f32 %v1017_v21  ;;  %v1029_v25 = vand.u32 2147483648, %v1017_v21  ;;  %v1027_v27 = vand.u32 2147483647, %v1017_v21  ;;  %vm1023_vm9 = vweird.f32 %v1017_v21  ;;  %p1929_p9 = pnand %p1928_p7, %p1924_p5 }
 0x2dd   : > { %v1030_v28 = vor.u32 1.1754944e-38, %v1029_v25  ;;  %vm1028_vm11 = vcmp.eq.f32.partialorder %v1027_v27, 8.507059e+37 }
 0x2e1   : > { %v1780_v22 = vpop.eup %1779 }
 0x2e2   : > { %v1019_v23 = vmul.f32 %v1780_v22, %v1017_v21  ;;  %vm1024_vm8 = vweird.f32 %v1780_v22 }
 0x2e3   : > { %vm1025_vm10 = vmor %vm1023_vm9, %vm1024_vm8 }
 0x2e4   : > { %v1020_v24 = vsub.f32 1.0, %v1019_v23 }
 0x2e6   : > { %v1021_v26 = vmul.f32 %v1780_v22, %v1020_v24 }
 0x2e8   : > { %v1022_v0 = vadd.f32 %v1780_v22, %v1021_v26 }
 0x2ea   : > { %v1026_v32 = vsel %vm1025_vm10, %v1780_v22, %v1022_v0 }
 0x2eb   : > { %v1031_v33 = vsel %vm1028_vm11, %v1030_v28, %v1026_v32 }
 0x2ec   : > { %v1033_v34 = vmul.f32 %v1031_v33, %v809_v15 }
 0x2ee   : > { %v1037_v35 = vpack.c.bf16 %v1033_v34, %v1033_v34 }
 0x2f0   : > { %1520 = vmatmul.msk.bf16.vlgmr.msrb.gmra.mxu0 %vm416_vm0, %v1037_v35 }
 0x32b   : > { %v871_v40 = vpop.permute.xlu2 %870 }
 0x32c   : > { %v879_v30 = vsel %vm416_vm0, %v809_v15, %v871_v40 }
 0x342   : > { %v877_v19 = vpop.permute.xlu1 %876  ;;  %v874_v20 = vpop.permute.xlu0 %873 }
 0x343   : > { %v880_v54 = vsel %vm418_vm1, %v879_v30, %v874_v20 }
 0x344   : > { %v881_v58 = vsel %vm420_vm2, %v880_v54, %v877_v19 }
 0x345   : > { %v2410_v62 = vsub.f32 %v881_v58, %v882_v41  ;;  %v2412_v63 = vsub.f32 %v881_v58, %v883_v42  ;;  %v2414_v44 = vsub.f32 %v881_v58, %v884_v46 }
 0x347   : > { %vm890_vm0 = vcmp.ge.f32.partialorder %v2414_v44, 0.0  ;;  %vm896_vm1 = vcmp.lt.f32.partialorder %v2414_v44, %v893_v47  ;;  %v920_v5 = vmul.f32 %v917_v48, %v2414_v44  ;;  %vm888_vm2 = vcmp.ge.f32.partialorder %v2410_v62, 0.0 }
 0x348   : > { %vm899_vm13 = vmand %vm890_vm0, %vm896_vm1  ;;  %vm889_vm14 = vcmp.ge.f32.partialorder %v2412_v63, 0.0  ;;  %vm894_vm15 = vcmp.lt.f32.partialorder %v2410_v62, %v891_v49  ;;  %vm895_vm3 = vcmp.lt.f32.partialorder %v2412_v63, %v892_v18  ;;  %v918_v6 = vmul.f32 %v915_v29, %v2410_v62 }
 0x349   : > { %v1510_v7 = vsel %vm899_vm13, 1.0, %v1991_v39  ;;  %vm897_vm4 = vmand %vm888_vm2, %vm894_vm15  ;;  %v927_v8 = vsub.f32 %v924_v31, %v2410_v62  ;;  %v929_v9 = vsub.f32 %v926_v51, %v2414_v44  ;;  %v928_v10 = vsub.f32 %v925_v50, %v2412_v63  ;;  %v1671_v50 = vld [vmem:[%s2605_s5 + $0xb8] sm:$0xff]  ;;  %v1670_v51 = vld [vmem:[%s2605_s5 + $0xb0] sm:$0xff] }
 0x34a   : > { %910 = vrot.lane.b32.xlu0 %v1510_v7, %s1989_s15  ;;  %v923_v11 = vmul.f32 %v1510_v7, %v920_v5  ;;  %vm898_vm5 = vmand %vm889_vm14, %vm895_vm3  ;;  %v1508_v12 = vsel %vm897_vm4, 1.0, %v1991_v39  ;;  %v919_v13 = vmul.f32 %v916_v52, %v2412_v63  ;;  %v963_v14 = vsub.f32 %v960_v53, %v2410_v62  ;;  %1236 = vmatpush.bf16.msrb.mxu2 %v1671_v50  ;;  %v2461_v52 = vld [vmem:[#allocation7 + $0x18] sm:$0x7]  ;;  %v1669_v53 = vld [vmem:[%s2605_s5 + $0xa8] sm:$0xff] }
 0x34b   : > { %v1509_v15 = vsel %vm898_vm5, 1.0, %v1991_v39  ;;  %v921_v16 = vmul.f32 %v1508_v12, %v918_v6  ;;  %v933_v17 = vmul.f32 %v930_v55, %v927_v8  ;;  %v935_v21 = vmul.f32 %v932_v59, %v929_v9  ;;  %v1668_v59 = vld [vmem:[%s2605_s5 + $0xa0] sm:$0xff] }
 0x34c   : > { %v1764_v22 = vpack.i.bf16 %v1509_v15, %v1508_v12  ;;  %v934_v23 = vmul.f32 %v931_v56, %v928_v10  ;;  %v922_v24 = vmul.f32 %v1509_v15, %v919_v13  ;;  %v969_v25 = vmul.f32 %v966_v60, %v963_v14 }
 0x34d   : > { %v954_v26 = vmul.f32 %v951_v57, %v2410_v62  ;;  %v964_v27 = vsub.f32 %v961_v61, %v2412_v63  ;;  %v965_v0 = vsub.f32 %v962_v43, %v2414_v44  ;;  %v955_v28 = vmul.f32 %v952_v3, %v2412_v63  ;;  %v816_v3 = vld [vmem:[#allocation7 + $0x28] sm:$0x7] }
 0x34e   : > { %1765 = vrot.lane.b32.xlu2 %v1764_v22, %s1989_s15  ;;  %v956_v32 = vmul.f32 %v953_v4, %v2414_v44  ;;  %1237 = vmatpush.bf16.msrb.mxu2 %v1670_v51  ;;  %v987_v56 = vperm.slane %v2461_v52, 1  ;;  %v989_v6 = vperm.slane %v816_v3, 1  ;;  %v1666_v22 = vld [vmem:[%s2605_s5 + $0x90] sm:$0xff] }
 0x34f   : > { %v970_v39 = vmul.f32 %v967_v2, %v964_v27  ;;  %v971_v33 = vmul.f32 %v968_v45, %v965_v0  ;;  %v1667_v2 = vld [vmem:[%s2605_s5 + $0x98] sm:$0xff]  ;;  %v2479_v45 = vld [vmem:[#allocation7 + $0x20] sm:$0x7]  ;;  %v1661_v27 = vld [vmem:[%s2605_s5 + $0x68] sm:$0xff] }
 0x350   : > { %v990_v61 = vmul.f32 %v987_v56, %v2410_v62  ;;  %v988_v5 = vperm.slane %v2479_v45, 1  ;;  %v992_v14 = vmul.f32 %v989_v6, %v2414_v44  ;;  %v1664_v0 = vld [vmem:[%s2605_s5 + $0x80] sm:$0xff]  ;;  %v997_v50 = vperm.slane %v2479_v45, 0 }
 0x352   : > { %1238 = vmatpush.bf16.msrb.mxu2 %v1669_v53  ;;  %v991_v12 = vmul.f32 %v988_v5, %v2412_v63  ;;  %v1002_v53 = vperm.slane %v2461_v52, 2 }
 0x356   : > { %1239 = vmatpush.bf16.msrb.mxu2 %v1668_v59 }
 0x35a   : > { %1240 = vmatpush.bf16.msrb.mxu2 %v1667_v2 }
 0x35e   : > { %1241 = vmatpush.bf16.msrb.mxu2 %v1666_v22 }
 0x36d   : > { %v2444_v34 = vpop.f32.mrf.mxu0 }
 0x375   : > { %v1064_v35 = vpop.f32.mrf.mxu0 }
 0x376   : > { %v1650_v35 = vld [vmem:[%s2605_s5 + $0x10] sm:$0xff] }
 0x3a8   : > { %v1766_v36 = vpop.permute.xlu2 %1765 }
 0x3a9   : > { %v1768_v37 = vunpack.i.h.bf16 %v1766_v36  ;;  %v1767_v38 = vunpack.i.l.bf16 %v1766_v36  ;;  %v1658_v36 = vld [vmem:[%s2605_s5 + $0x50] sm:$0xff] }
 0x3ab   : > { %v913_v40 = vsel %vm454_vm12, %v1767_v38, %v1768_v37 }
 0x3ac   : > { %v936_v41 = vmul.f32 %v933_v17, %v913_v40  ;;  %v1655_v17 = vld [vmem:[%s2605_s5 + $0x38] sm:$0xff]  ;;  %v1657_v40 = vld [vmem:[%s2605_s5 + $0x48] sm:$0xff] }
 0x3ad   : > { %1210 = vmatpush.bf16.msra.mxu0 %v1655_v17 }
 0x3ae   : > { %v939_v42 = vadd.f32 %v936_v41, %v921_v16  ;;  %v1648_v41 = vld [vmem:[%s2605_s5] sm:$0xff] }
 0x3b0   : > { %942 = vrot.lane.b32.xlu1 %v939_v42, %s1989_s15  ;;  %v957_v46 = vmul.f32 %v954_v26, %v939_v42  ;;  %v1653_v26 = vld [vmem:[%s2605_s5 + $0x28] sm:$0xff]  ;;  %v1656_v42 = vld [vmem:[%s2605_s5 + $0x40] sm:$0xff] }
 0x3bc   : > { %v911_v47 = vpop.permute.xlu0 %910 }
 0x3bd   : > { %v912_v48 = vsel %vm454_vm12, %v1768_v37, %v911_v47  ;;  %v914_v49 = vsel %vm454_vm12, %v911_v47, %v1767_v38  ;;  %v998_v37 = vperm.slane %v816_v3, 0  ;;  %v1649_v38 = vld [vmem:[%s2605_s5 + $0x8] sm:$0xff]  ;;  %v1004_v47 = vperm.slane %v816_v3, 2 }
 0x3be   : > { %v937_v30 = vmul.f32 %v934_v23, %v912_v48  ;;  %v938_v18 = vmul.f32 %v935_v21, %v914_v49  ;;  %v1663_v21 = vld [vmem:[%s2605_s5 + $0x78] sm:$0xff]  ;;  %v1654_v23 = vld [vmem:[%s2605_s5 + $0x30] sm:$0xff] }
 0x3bf   : > { %1223 = vmatpush.bf16.msrb.mxu1 %v1663_v21  ;;  %1211 = vmatpush.bf16.msra.mxu0 %v1654_v23 }
 0x3c0   : > { %v940_v29 = vadd.f32 %v937_v30, %v922_v24  ;;  %v941_v31 = vadd.f32 %v938_v18, %v923_v11  ;;  %v1662_v24 = vld [vmem:[%s2605_s5 + $0x70] sm:$0xff] }
 0x3c2   : > { %944 = vrot.lane.b32.xlu2 %v940_v29, %s1989_s15  ;;  %946 = vrot.lane.b32.xlu0 %v941_v31, %s1989_s15  ;;  %v958_v19 = vmul.f32 %v955_v28, %v940_v29  ;;  %v959_v20 = vmul.f32 %v956_v32, %v941_v31  ;;  %v1652_v28 = vld [vmem:[%s2605_s5 + $0x20] sm:$0xff] }
 0x3c3   : > { %1224 = vmatpush.bf16.msrb.mxu1 %v1662_v24  ;;  %1212 = vmatpush.bf16.msra.mxu0 %v1653_v26  ;;  %v1660_v32 = vld [vmem:[%s2605_s5 + $0x60] sm:$0xff] }
 0x3c7   : > { %1225 = vmatpush.bf16.msrb.mxu1 %v1661_v27  ;;  %1213 = vmatpush.bf16.msra.mxu0 %v1652_v28 }
 0x3cb   : > { %1226 = vmatpush.bf16.msrb.mxu1 %v1660_v32 }
 0x41c   : > { %v945_v54 = vpop.permute.xlu2 %944 }
 0x422   : > { %v943_v55 = vpop.permute.xlu1 %942 }
 0x423   : > { %v949_v57 = vsel %vm454_vm12, %v943_v55, %v945_v54 }
 0x424   : > { %v972_v58 = vmul.f32 %v969_v25, %v949_v57  ;;  %v1665_v25 = vld [vmem:[%s2605_s5 + $0x88] sm:$0xff] }
 0x425   : > { %1242 = vmatpush.bf16.msrb.mxu2 %v1665_v25 }
 0x426   : > { %v975_v60 = vadd.f32 %v972_v58, %v957_v46  ;;  %v1001_v46 = vsub.f32 %v998_v37, %v2414_v44  ;;  %v1000_v44 = vsub.f32 %v997_v50, %v2412_v63 }
 0x428   : > { %978 = vrot.lane.b32.xlu1 %v975_v60, %s1989_s15  ;;  %v2474_v43 = vmul.f32 %v990_v61, %v975_v60  ;;  %v1007_v49 = vmul.f32 %v1004_v47, %v1001_v46 }
 0x429   : > { %1243 = vmatpush.bf16.msrb.mxu2 %v1664_v0 }
 0x434   : > { %v947_v4 = vpop.permute.xlu0 %946 }
 0x435   : > { %v948_v7 = vsel %vm454_vm12, %v945_v54, %v947_v4  ;;  %v950_v8 = vsel %vm454_vm12, %v947_v4, %v943_v55  ;;  %v1003_v54 = vperm.slane %v2479_v45, 2 }
 0x436   : > { %v973_v9 = vmul.f32 %v970_v39, %v948_v7  ;;  %v974_v10 = vmul.f32 %v971_v33, %v950_v8  ;;  %v1651_v39 = vld [vmem:[%s2605_s5 + $0x18] sm:$0xff] }
 0x437   : > { %v1659_v33 = vld [vmem:[%s2605_s5 + $0x58] sm:$0xff]  ;;  %1214 = vmatpush.bf16.msra.mxu0 %v1651_v39  ;;  %v1006_v56 = vmul.f32 %v1003_v54, %v1000_v44 }
 0x438   : > { %v976_v11 = vadd.f32 %v973_v9, %v958_v19  ;;  %v977_v13 = vadd.f32 %v974_v10, %v959_v20  ;;  %1227 = vmatpush.bf16.msrb.mxu1 %v1659_v33  ;;  %v996_v20 = vperm.slane %v2461_v52, 0 }
 0x43a   : > { %980 = vrot.lane.b32.xlu0 %v976_v11, %s1989_s15  ;;  %v2489_v15 = vmul.f32 %v991_v12, %v976_v11  ;;  %982 = vrot.lane.b32.xlu2 %v977_v13, %s1989_s15  ;;  %v995_v16 = vmul.f32 %v992_v14, %v977_v13  ;;  %v999_v51 = vsub.f32 %v996_v20, %v2410_v62 }
 0x43b   : > { %1215 = vmatpush.bf16.msra.mxu0 %v1650_v35 }
 0x43c   : > { %1228 = vmatpush.bf16.msrb.mxu1 %v1658_v36  ;;  %v1005_v55 = vmul.f32 %v1002_v53, %v999_v51 }
 0x43f   : > { %1216 = vmatpush.bf16.msra.mxu0 %v1649_v38 }
 0x440   : > { %1229 = vmatpush.bf16.msrb.mxu1 %v1657_v40 }
 0x443   : > { %1217 = vmatpush.bf16.msra.mxu0 %v1648_v41 }
 0x444   : > { %1230 = vmatpush.bf16.msrb.mxu1 %v1656_v42 }
 0x494   : > { %v983_v48 = vpop.permute.xlu2 %982 }
 0x49a   : > { %v979_v30 = vpop.permute.xlu1 %978 }
 0x49b   : > { %v986_v18 = vsel %vm454_vm12, %v983_v48, %v979_v30 }
 0x49c   : > { %v1010_v29 = vmul.f32 %v1007_v49, %v986_v18 }
 0x49e   : > { %v1013_v31 = vadd.f32 %v1010_v29, %v995_v16 }
 0x4a0   : > { %v1036_v19 = vpack.c.bf16 %v1013_v31, %v1013_v31 }
 0x4a2   : > { %1244 = vmatmul.bf16.vlgmr.msrb.gmra.mxu2 %v1036_v19 }
 0x4ac   : > { %v981_v57 = vpop.permute.xlu0 %980 }
 0x4ad   : > { %v984_v58 = vsel %vm454_vm12, %v981_v57, %v983_v48  ;;  %v985_v59 = vsel %vm454_vm12, %v979_v30, %v981_v57 }
 0x4ae   : > { %v1008_v60 = vmul.f32 %v1005_v55, %v985_v59  ;;  %v1009_v61 = vmul.f32 %v1006_v56, %v984_v58 }
 0x4b0   : > { %v1011_v2 = vadd.f32 %v1008_v60, %v2474_v43  ;;  %v1012_v62 = vadd.f32 %v1009_v61, %v2489_v15 }
 0x4b2   : > { %v1034_v63 = vpack.c.bf16 %v1011_v2, %v1011_v2  ;;  %v1035_v3 = vpack.c.bf16 %v1012_v62, %v1012_v62 }
 0x4b4   : > { %1218 = vmatmul.bf16.vlgmr.msra.gmra.mxu0 %v1034_v63  ;;  %1231 = vmatmul.bf16.vlgmr.msrb.gmra.mxu1 %v1035_v3 }
 0x525   : > { %v1245_v52 = vpop.f32.mrf.mxu2 }
 0x52d   : > { %v1247_v45 = vpop.f32.mrf.mxu2 }
 0x531   : > { %v1219_v4 = vpop.f32.mrf.mxu0  ;;  %v1232_v5 = vpop.f32.mrf.mxu1 }
 0x532   : > { %v1220_v6 = vadd.f32 %v1219_v4, %v2444_v34 }
 0x534   : > { %v1233_v7 = vadd.f32 %v1232_v5, %v1220_v6 }
 0x536   : > { %v1246_v1 = vadd.f32 %v1245_v52, %v1233_v7 }
 0x538   : > { %v1617_v8 = vmul.f32 -1.442695, %v1246_v1 }
 0x539   : > { %v1221_v9 = vpop.f32.mrf.mxu0  ;;  %v1234_v10 = vpop.f32.mrf.mxu1 }
 0x53a   : > { %1781 = vpow2.f32 %v1617_v8 }
 0x540   : > { %v1782_v43 = vpop.eup %1781 }
 0x541   : > { %v1252_v11 = vadd.f32 1.0, %v1782_v43 }
 0x543   : > { %1783 = vrcp.f32 %v1252_v11  ;;  %v1264_v15 = vand.u32 2147483648, %v1252_v11  ;;  %v1262_v16 = vand.u32 2147483647, %v1252_v11  ;;  %vm1258_vm6 = vweird.f32 %v1252_v11 }
 0x545   : > { %v1265_v21 = vor.u32 1.1754944e-38, %v1264_v15  ;;  %vm1263_vm8 = vcmp.eq.f32.partialorder %v1262_v16, 8.507059e+37 }
 0x549   : > { %v1784_v12 = vpop.eup %1783 }
 0x54a   : > { %v1254_v13 = vmul.f32 %v1784_v12, %v1252_v11  ;;  %vm1259_vm12 = vweird.f32 %v1784_v12 }
 0x54b   : > { %vm1260_vm7 = vmor %vm1258_vm6, %vm1259_vm12 }
 0x54c   : > { %v1255_v14 = vsub.f32 1.0, %v1254_v13 }
 0x54e   : > { %v1256_v34 = vmul.f32 %v1784_v12, %v1255_v14 }
 0x550   : > { %v1257_v17 = vadd.f32 %v1784_v12, %v1256_v34 }
 0x552   : > { %v1261_v22 = vsel %vm1260_vm7, %v1784_v12, %v1257_v17 }
 0x553   : > { %v1266_v23 = vsel %vm1263_vm8, %v1265_v21, %v1261_v22 }
 0x554   : > { %1268 = vst [vmem:[%s345_s28] sm:$0xff] %v1266_v23 }
 0x555   : > { %1932 = shalt.err (!%p1929_p9)
}
 0x556   : > { %1688 = dma.vmem_to_hbm [thread:$0]  (%p2108_p13), %s1283_s10, 128, %s1285_s30, %s1270_s8  }
 0x557 PF: > { %s1296_s17 = sand.u32 1, %s1967_s24   ;;  %p2616_p10 = scmp.ge.s32.totalorder %s1979_s27, 2 }
 0x558   : > { %s1297_s23 = scalar_lea.sflag [#allocation4], %s1296_s17 }
 0x559   : > { %p1705_p11 = pnand %p2616_p10, %p2113_p4 }
 0x55b   : > { %p1706_p0 = pneg %p1705_p11 }
 0x55d   : > { %1962 = dma.done.wait (%p1706_p0), %s1297_s23, 128  }
 0x55e   : > { %1964 = vsyncadd (%p1706_p0), %s1297_s23, 4294967168  ;;  %p22_p2 = scmp.ge.s32.totalorder %s2088_s11, 4   ;;  %s2617_s24 = smov %s1971_s25 }
 0x55f   : > { %s2618_s25 = smov %s1975_s26  ;;  %s2619_s26 = smov %s2100_s14 }
 0x560   : > { %s2620_s27 = smov %s2088_s11  ;;  %24 = sbr.rel (!%p22_p2) target bundleno = 9 (0x9), region = 105 }
 0x565   :  { %1303 = vsyncpa [#allocation3], 1 }
 0x566   :  { %1305 = vsyncpa [#allocation3 + $0x1], 1 }
 0x567   :  { %1306 = vsyncpa [#allocation6], 1 }
 0x568   :  { %1307 = vsyncpa [#allocation9], 1 }
 0x569   :  { %1308 = vsyncpa [#allocation4], 1 }
 0x56a   :  { %1310 = vsyncpa [#allocation4 + $0x1], 1 }

</bundles_post_ra>
